<compile_context>
chip_gen: v7x
topology: tpu7x:2x2x1
jax: 0.10.0
libtpu: 0.0.40
codegen_flags: <defaults>
</compile_context>

<pallas_src>
import jax
import jax.numpy as jnp
from jax.experimental import pallas as pl
from jax.experimental.pallas import tpu as pltpu

LANE = 128      # matmul feature dims are padded to the 128-lane vreg width
SUBLANE = 8     # batch tiles must be sublane (8) aligned


def _round_up(n, m):
    return (n + m - 1) // m * m


# ------------------------------- kernel ---------------------------------------

def dqn_mlp_kernel(x_ref, w1_ref, b1_ref, w2_ref, b2_ref,
                   w3_ref, b3_ref, w4_ref, b4_ref, out_ref):
    """Fused 4-layer MLP forward for one batch row-tile (weights VMEM-resident)."""
    # x arrives in its natural [tm, in_dim] f32 layout; cast to bf16 (MXU native).
    x = x_ref[...].astype(jnp.bfloat16)

    # fc1 + ReLU  (bf16 MXU matmul, f32 accumulate; bias/ReLU in f32 on the VPU)
    h = jnp.dot(x, w1_ref[...], preferred_element_type=jnp.float32) + b1_ref[...]
    h = jnp.maximum(h, 0.0)
    # fc2 + ReLU
    h = jnp.dot(h.astype(jnp.bfloat16), w2_ref[...],
                preferred_element_type=jnp.float32) + b2_ref[...]
    h = jnp.maximum(h, 0.0)
    # fc3 + ReLU
    h = jnp.dot(h.astype(jnp.bfloat16), w3_ref[...],
                preferred_element_type=jnp.float32) + b3_ref[...]
    h = jnp.maximum(h, 0.0)
    # fc4 (no activation). Matmul stays 128-lane padded (MXU has slack); only the
    # real Q-value lanes are stored, so the HBM write is B*output_dim*4 bytes.
    q = jnp.dot(h.astype(jnp.bfloat16), w4_ref[...],
                preferred_element_type=jnp.float32) + b4_ref[...]
    out_ref[...] = q[:, :out_ref.shape[1]]


# ----------------------------- parameters -------------------------------------

def init_linear(key, fan_in, fan_out):
    """PyTorch nn.Linear-style init; weight stored [in, out] (transposed vs torch)."""
    kw, kb = jax.random.split(key)
    bound = 1.0 / jnp.sqrt(jnp.float32(fan_in))
    w = jax.random.uniform(kw, (fan_in, fan_out), jnp.float32, -bound, bound)
    b = jax.random.uniform(kb, (1, fan_out), jnp.float32, -bound, bound)
    return w, b


def make_params(key, input_dim, output_dim, hidden_dim):
    k1, k2, k3, k4 = jax.random.split(key, 4)
    w1, b1 = init_linear(k1, input_dim, hidden_dim)
    w2, b2 = init_linear(k2, hidden_dim, hidden_dim)
    w3, b3 = init_linear(k3, hidden_dim, hidden_dim // 2)
    w4, b4 = init_linear(k4, hidden_dim // 2, output_dim)
    return (w1, b1, w2, b2, w3, b3, w4, b4)


def _pad_weight(w, pad_in=True, pad_out=True):
    fi, fo = w.shape
    fi_p = _round_up(fi, LANE) if pad_in else fi
    fo_p = _round_up(fo, LANE) if pad_out else fo
    wp = jnp.zeros((fi_p, fo_p), jnp.bfloat16)
    return wp.at[:fi, :fo].set(w.astype(jnp.bfloat16))


def _pad_bias(b):
    fo = b.shape[-1]
    bp = jnp.zeros((1, _round_up(fo, LANE)), jnp.float32)
    return bp.at[:, :fo].set(b.astype(jnp.float32))


def prepare_params(params):
    """One-time host prep: bf16 weights / f32 biases, hidden dims padded to 128.

    w1 keeps its natural fan_in so x needs no lane padding; w4's padded output
    lanes are zero and sliced away inside the kernel.
    """
    w1, b1, w2, b2, w3, b3, w4, b4 = params
    return (_pad_weight(w1, pad_in=False), _pad_bias(b1),
            _pad_weight(w2), _pad_bias(b2),
            _pad_weight(w3), _pad_bias(b3),
            _pad_weight(w4), _pad_bias(b4))


# ------------------------------- forward --------------------------------------

def dqn_forward(x, padded_params, output_dim, *, tm=1024):
    """Forward pass. x: [B, input_dim] f32 (natural layout). Returns [B, output_dim] f32."""
    w1, b1, w2, b2, w3, b3, w4, b4 = padded_params
    B, in_dim = x.shape
    assert w1.shape[0] == in_dim

    # Batch tile / grid: large tiles amortize the ~0.35us per-grid-step cost;
    # cap at 2048 so VMEM stays a few MiB (under v5e's 16 MiB default limit).
    tm = min(tm, 2048)
    if B >= 16:
        # Guarantee >=2 grid steps so the "parallel" axis shards across v7x's 2 TCs.
        tm = min(tm, _round_up((B + 1) // 2, SUBLANE))
    tm = max(SUBLANE, min(tm, _round_up(B, SUBLANE)))
    grid = (pl.cdiv(B, tm),)   # last block may overhang; OOB rows are masked on write

    def row_tile(last):        # x / out: one row tile per grid step
        return pl.BlockSpec((tm, last), lambda i: (i, 0))

    def resident(shape):       # weights / biases: constant index_map -> VMEM-resident
        return pl.BlockSpec(shape, lambda i: (0, 0))
    # TODO(synk): at realistic hidden_dim (512-1024) add pipeline_mode=pl.Buffered(1)
    # on the resident weight specs (or add a K grid axis) to respect v7x's 64 MiB
    # per-TC VMEM; at hidden_dim=32 the resident weights are ~100 KiB so it's moot.

    h1p, h2p, h3p, outp = w1.shape[1], w2.shape[1], w3.shape[1], w4.shape[1]
    flops = 2 * B * (in_dim * h1p + h1p * h2p + h2p * h3p + h3p * outp)
    bytes_accessed = (B * in_dim * 4
                      + sum(int(p.size) * p.dtype.itemsize for p in padded_params)
                      + B * output_dim * 4)

    return pl.pallas_call(
        dqn_mlp_kernel,
        out_shape=jax.ShapeDtypeStruct((B, output_dim), jnp.float32),
        grid=grid,
        in_specs=[
            row_tile(in_dim),
            resident(w1.shape), resident(b1.shape),
            resident(w2.shape), resident(b2.shape),
            resident(w3.shape), resident(b3.shape),
            resident(w4.shape), resident(b4.shape),
        ],
        out_specs=row_tile(output_dim),
        compiler_params=pltpu.CompilerParams(
            dimension_semantics=("parallel",)),
        cost_estimate=pl.CostEstimate(
            flops=flops, transcendentals=0, bytes_accessed=bytes_accessed),
    )(x, w1, b1, w2, b2, w3, b3, w4, b4)


# --------------------------------- demo ----------------------------------------

if __name__ == "__main__":
    input_dim, output_dim, hidden_dim = 16, 4, 32

    key = jax.random.PRNGKey(0)
    k_params, k_x1, k_x2 = jax.random.split(key, 3)

    params = make_params(k_params, input_dim, output_dim, hidden_dim)
    padded_params = prepare_params(params)
    w1, b1, w2, b2, w3, b3, w4, b4 = params

    def reference(x):
        h = jnp.maximum(x @ w1 + b1, 0.0)
        h = jnp.maximum(h @ w2 + b2, 0.0)
        h = jnp.maximum(h @ w3 + b3, 0.0)
        return h @ w4 + b4

    # batch=8 exercises a single-step grid; batch=44 exercises a 2-step grid with
    # an overhanging, write-masked last block (cdiv-style tiling).
    for batch, kx in ((8, k_x1), (44, k_x2)):
        x = jax.random.normal(kx, (batch, input_dim), jnp.float32)
        out = dqn_forward(x, padded_params, output_dim)
        jax.block_until_ready(out)
        ref = reference(x)
        assert out.shape == (batch, output_dim)
        max_err = float(jnp.max(jnp.abs(out - ref)))
        assert jnp.allclose(out, ref, atol=5e-2, rtol=5e-2), \
            f"batch={batch} max abs err {max_err}"

    print("KERNEL_OK")
</pallas_src>

<mosaic_0001>
module attributes {stable_mosaic.version = 11 : i64} {
  func.func @dqn_mlp_kernel(%arg0: i32, %arg1: memref<8x16xf32, #tpu.memory_space<vmem>>, %arg2: memref<16x128xbf16, #tpu.memory_space<vmem>>, %arg3: memref<1x128xf32, #tpu.memory_space<vmem>>, %arg4: memref<128x128xbf16, #tpu.memory_space<vmem>>, %arg5: memref<1x128xf32, #tpu.memory_space<vmem>>, %arg6: memref<128x128xbf16, #tpu.memory_space<vmem>>, %arg7: memref<1x128xf32, #tpu.memory_space<vmem>>, %arg8: memref<128x128xbf16, #tpu.memory_space<vmem>>, %arg9: memref<1x128xf32, #tpu.memory_space<vmem>>, %arg10: memref<8x4xf32, #tpu.memory_space<vmem>>) attributes {dimension_semantics = [#tpu.dimension_semantics<parallel>], iteration_bounds = array<i64: 1>, scalar_prefetch = 0 : i64, scratch_operands = 0 : i64, tpu.core_type = #tpu.core_type<tc>, window_params = [{transform_indices = @transform_0, window_bounds = array<i64: 8, 16>}, {pipeline_mode = #tpu.pipeline_mode<synchronous>, transform_indices = @transform_1, window_bounds = array<i64: 16, 128>}, {pipeline_mode = #tpu.pipeline_mode<synchronous>, transform_indices = @transform_2, window_bounds = array<i64: 1, 128>}, {pipeline_mode = #tpu.pipeline_mode<synchronous>, transform_indices = @transform_3, window_bounds = array<i64: 128, 128>}, {pipeline_mode = #tpu.pipeline_mode<synchronous>, transform_indices = @transform_4, window_bounds = array<i64: 1, 128>}, {pipeline_mode = #tpu.pipeline_mode<synchronous>, transform_indices = @transform_5, window_bounds = array<i64: 128, 128>}, {pipeline_mode = #tpu.pipeline_mode<synchronous>, transform_indices = @transform_6, window_bounds = array<i64: 1, 128>}, {pipeline_mode = #tpu.pipeline_mode<synchronous>, transform_indices = @transform_7, window_bounds = array<i64: 128, 128>}, {pipeline_mode = #tpu.pipeline_mode<synchronous>, transform_indices = @transform_8, window_bounds = array<i64: 1, 128>}, {transform_indices = @transform_9, window_bounds = array<i64: 8, 4>}]} {
    %c0 = arith.constant 0 : index
    %c0_0 = arith.constant 0 : index
    %0 = vector.load %arg1[%c0, %c0_0] : memref<8x16xf32, #tpu.memory_space<vmem>>, vector<8x16xf32>
    %1 = arith.truncf %0 : vector<8x16xf32> to vector<8x16xbf16>
    %c0_1 = arith.constant 0 : index
    %c0_2 = arith.constant 0 : index
    %2 = vector.load %arg2[%c0_1, %c0_2] : memref<16x128xbf16, #tpu.memory_space<vmem>>, vector<16x128xbf16>
    %cst = arith.constant dense<0.000000e+00> : vector<8x128xf32>
    %3 = tpu.matmul %1, %2, %cst {dimension_numbers = #tpu.dot_dimension_numbers<[1], [0], [0], [1], [0, 0, 1, 1], [], []>} : vector<8x16xbf16>, vector<16x128xbf16>, vector<8x128xf32> -> vector<8x128xf32>
    %c0_3 = arith.constant 0 : index
    %c0_4 = arith.constant 0 : index
    %4 = vector.load %arg3[%c0_3, %c0_4] : memref<1x128xf32, #tpu.memory_space<vmem>>, vector<1x128xf32>
    %5 = vector.broadcast %4 : vector<1x128xf32> to vector<8x128xf32>
    %6 = arith.addf %3, %5 : vector<8x128xf32>
    %cst_5 = arith.constant 0.000000e+00 : f32
    %7 = vector.broadcast %cst_5 : f32 to vector<8x128xf32>
    %8 = arith.maximumf %6, %7 : vector<8x128xf32>
    %9 = arith.truncf %8 : vector<8x128xf32> to vector<8x128xbf16>
    %c0_6 = arith.constant 0 : index
    %c0_7 = arith.constant 0 : index
    %10 = vector.load %arg4[%c0_6, %c0_7] : memref<128x128xbf16, #tpu.memory_space<vmem>>, vector<128x128xbf16>
    %cst_8 = arith.constant dense<0.000000e+00> : vector<8x128xf32>
    %11 = tpu.matmul %9, %10, %cst_8 {dimension_numbers = #tpu.dot_dimension_numbers<[1], [0], [0], [1], [0, 0, 1, 1], [], []>} : vector<8x128xbf16>, vector<128x128xbf16>, vector<8x128xf32> -> vector<8x128xf32>
    %c0_9 = arith.constant 0 : index
    %c0_10 = arith.constant 0 : index
    %12 = vector.load %arg5[%c0_9, %c0_10] : memref<1x128xf32, #tpu.memory_space<vmem>>, vector<1x128xf32>
    %13 = vector.broadcast %12 : vector<1x128xf32> to vector<8x128xf32>
    %14 = arith.addf %11, %13 : vector<8x128xf32>
    %cst_11 = arith.constant 0.000000e+00 : f32
    %15 = vector.broadcast %cst_11 : f32 to vector<8x128xf32>
    %16 = arith.maximumf %14, %15 : vector<8x128xf32>
    %17 = arith.truncf %16 : vector<8x128xf32> to vector<8x128xbf16>
    %c0_12 = arith.constant 0 : index
    %c0_13 = arith.constant 0 : index
    %18 = vector.load %arg6[%c0_12, %c0_13] : memref<128x128xbf16, #tpu.memory_space<vmem>>, vector<128x128xbf16>
    %cst_14 = arith.constant dense<0.000000e+00> : vector<8x128xf32>
    %19 = tpu.matmul %17, %18, %cst_14 {dimension_numbers = #tpu.dot_dimension_numbers<[1], [0], [0], [1], [0, 0, 1, 1], [], []>} : vector<8x128xbf16>, vector<128x128xbf16>, vector<8x128xf32> -> vector<8x128xf32>
    %c0_15 = arith.constant 0 : index
    %c0_16 = arith.constant 0 : index
    %20 = vector.load %arg7[%c0_15, %c0_16] : memref<1x128xf32, #tpu.memory_space<vmem>>, vector<1x128xf32>
    %21 = vector.broadcast %20 : vector<1x128xf32> to vector<8x128xf32>
    %22 = arith.addf %19, %21 : vector<8x128xf32>
    %cst_17 = arith.constant 0.000000e+00 : f32
    %23 = vector.broadcast %cst_17 : f32 to vector<8x128xf32>
    %24 = arith.maximumf %22, %23 : vector<8x128xf32>
    %25 = arith.truncf %24 : vector<8x128xf32> to vector<8x128xbf16>
    %c0_18 = arith.constant 0 : index
    %c0_19 = arith.constant 0 : index
    %26 = vector.load %arg8[%c0_18, %c0_19] : memref<128x128xbf16, #tpu.memory_space<vmem>>, vector<128x128xbf16>
    %cst_20 = arith.constant dense<0.000000e+00> : vector<8x128xf32>
    %27 = tpu.matmul %25, %26, %cst_20 {dimension_numbers = #tpu.dot_dimension_numbers<[1], [0], [0], [1], [0, 0, 1, 1], [], []>} : vector<8x128xbf16>, vector<128x128xbf16>, vector<8x128xf32> -> vector<8x128xf32>
    %c0_21 = arith.constant 0 : index
    %c0_22 = arith.constant 0 : index
    %28 = vector.load %arg9[%c0_21, %c0_22] : memref<1x128xf32, #tpu.memory_space<vmem>>, vector<1x128xf32>
    %29 = vector.broadcast %28 : vector<1x128xf32> to vector<8x128xf32>
    %30 = arith.addf %27, %29 : vector<8x128xf32>
    %31 = vector.extract_strided_slice %30 {offsets = [0, 0], sizes = [8, 4], strides = [1, 1]} : vector<8x128xf32> to vector<8x4xf32>
    %c0_23 = arith.constant 0 : index
    %c0_24 = arith.constant 0 : index
    %32 = vector.load %arg10[%c0_23, %c0_24] : memref<8x4xf32, #tpu.memory_space<vmem>>, vector<8x4xf32>
    tpu.vector_store %arg10[%c0_23, %c0_24], %31 {strides = array<i32>} : memref<8x4xf32, #tpu.memory_space<vmem>>, vector<8x4xf32>,
    return
  }
  func.func @transform_0(%arg0: i32) -> (i32, i32) {
    %c0_i32 = arith.constant 0 : i32
    %c0_i32_0 = arith.constant 0 : i32
    return %arg0, %c0_i32 : i32, i32
  }
  func.func @transform_1(%arg0: i32) -> (i32, i32) {
    %c0_i32 = arith.constant 0 : i32
    %c0_i32_0 = arith.constant 0 : i32
    %c0_i32_1 = arith.constant 0 : i32
    return %c0_i32, %c0_i32_0 : i32, i32
  }
  func.func @transform_2(%arg0: i32) -> (i32, i32) {
    %c0_i32 = arith.constant 0 : i32
    %c0_i32_0 = arith.constant 0 : i32
    %c0_i32_1 = arith.constant 0 : i32
    return %c0_i32, %c0_i32_0 : i32, i32
  }
  func.func @transform_3(%arg0: i32) -> (i32, i32) {
    %c0_i32 = arith.constant 0 : i32
    %c0_i32_0 = arith.constant 0 : i32
    %c0_i32_1 = arith.constant 0 : i32
    return %c0_i32, %c0_i32_0 : i32, i32
  }
  func.func @transform_4(%arg0: i32) -> (i32, i32) {
    %c0_i32 = arith.constant 0 : i32
    %c0_i32_0 = arith.constant 0 : i32
    %c0_i32_1 = arith.constant 0 : i32
    return %c0_i32, %c0_i32_0 : i32, i32
  }
  func.func @transform_5(%arg0: i32) -> (i32, i32) {
    %c0_i32 = arith.constant 0 : i32
    %c0_i32_0 = arith.constant 0 : i32
    %c0_i32_1 = arith.constant 0 : i32
    return %c0_i32, %c0_i32_0 : i32, i32
  }
  func.func @transform_6(%arg0: i32) -> (i32, i32) {
    %c0_i32 = arith.constant 0 : i32
    %c0_i32_0 = arith.constant 0 : i32
    %c0_i32_1 = arith.constant 0 : i32
    return %c0_i32, %c0_i32_0 : i32, i32
  }
  func.func @transform_7(%arg0: i32) -> (i32, i32) {
    %c0_i32 = arith.constant 0 : i32
    %c0_i32_0 = arith.constant 0 : i32
    %c0_i32_1 = arith.constant 0 : i32
    return %c0_i32, %c0_i32_0 : i32, i32
  }
  func.func @transform_8(%arg0: i32) -> (i32, i32) {
    %c0_i32 = arith.constant 0 : i32
    %c0_i32_0 = arith.constant 0 : i32
    %c0_i32_1 = arith.constant 0 : i32
    return %c0_i32, %c0_i32_0 : i32, i32
  }
  func.func @transform_9(%arg0: i32) -> (i32, i32) {
    %c0_i32 = arith.constant 0 : i32
    %c0_i32_0 = arith.constant 0 : i32
    return %arg0, %c0_i32 : i32, i32
  }
}

</mosaic_0001>

<bundles_post_ra>
// kernel: tpu_custom_call.1
= control target key start
LH: loop header
LB: loop body
LE: loop exit
PB: predicated region body
PF: predicated region fallthrough
CT: control target
= control target key end

     0   :  { %14 = vsyncpa [#allocation3], 0  ;;  %s962_s0 = inlined_call_operand.hbm [shape: f32[8,16], index: 0, kind: input, shape index: {}]   ;;  %s963_s1 = inlined_call_operand.hbm [shape: bf16[16,128], index: 1, kind: input, shape index: {}]   ;;  %s964_s2 = inlined_call_operand.vmem [shape: f32[1,128], index: 2, kind: input, shape index: {}]   ;;  %s965_s3 = inlined_call_operand.hbm [shape: bf16[128,128], index: 3, kind: input, shape index: {}]   ;;  %s966_s4 = inlined_call_operand.vmem [shape: f32[1,128], index: 4, kind: input, shape index: {}]   ;;  %s967_s5 = inlined_call_operand.hbm [shape: bf16[128,128], index: 5, kind: input, shape index: {}]   ;;  %s968_s6 = inlined_call_operand.vmem [shape: f32[1,128], index: 6, kind: input, shape index: {}]   ;;  %s969_s7 = inlined_call_operand.hbm [shape: bf16[128,128], index: 7, kind: input, shape index: {}]   ;;  %s970_s8 = inlined_call_operand.vmem [shape: f32[1,128], index: 8, kind: input, shape index: {}]   ;;  %s971_s9 = inlined_call_operand.vmem [shape: f32[8,4], index: 9, kind: output, shape index: {}]  }
   0x1   :  { %15 = vsyncpa [#allocation5], 0 }
   0x2   :  { %16 = vsyncpa [#allocation8], 0  ;;  %s783_s30 = smov [#allocation4]   ;;  %s667_s13 = scalar_lea.hbm %s963_s1, 128 }
   0x3   :  { %s32_s10 = sshll.u32 %s783_s30, 4  ;;  %p668_p0 = scmp.ne.s32.totalorder %s963_s1, %s667_s13  ;;  %s33_s10 = int_to_ptr.vmem [resolvable:$true] %s32_s10 }
   0x4   :  { %p671_p1 = scmp.lt.u32.totalorder %s667_s13, %s963_s1 }
   0x6   :  { %p673_p2 = pnand %p671_p1, %p668_p0 }
   0x8   :  { %676 = shalt.err (!%p673_p2)
}
   0x9   :  { %s677_s18 = scalar_lea.vmem %s33_s10, 128  ;;  %p682_p4 = scmp.lt.s32.totalorder %s33_s10, %s33_s10 }
   0xa   :  { %p678_p3 = scmp.ne.s32.totalorder %s33_s10, %s677_s18  ;;  %p683_p5 = scmp.lt.s32.totalorder %s677_s18, %s677_s18 }
   0xc   :  { %p684_p6 = por %p683_p5, %p682_p4 }
   0xe   :  { %p685_p7 = pnand %p684_p6, %p678_p3 }
  0x10   :  { %688 = shalt.err (!%p685_p7)
}
  0x11   :  { %s784_s19 = smov 64   ;;  %s785_s20 = smov 4  }
  0x12   :  { %38 = dma.hbm_to_vmem [thread:$0]  %s963_s1, 128, %s33_s10, [#allocation5], %s784_s19, %s784_s19, %s785_s20  }
  0x13   :  { %s786_s23 = smov [#allocation7]   ;;  %s787_s25 = smov [#allocation2]  }
  0x14   :  { %s60_s24 = sshll.u32 %s786_s23, 4  ;;  %s23_s26 = sshll.u32 %s787_s25, 4  ;;  %s61_s24 = int_to_ptr.vmem [resolvable:$true] %s60_s24  ;;  %s24_s26 = int_to_ptr.vmem [resolvable:$true] %s23_s26 }
  0x15   :  { %s689_s29 = scalar_lea.hbm %s967_s5, 1024 }
  0x16   :  { %p690_p8 = scmp.ne.s32.totalorder %s967_s5, %s689_s29  ;;  %p693_p9 = scmp.lt.u32.totalorder %s689_s29, %s967_s5 }
  0x18   :  { %p695_p10 = pnand %p693_p9, %p690_p8 }
  0x1a   :  { %698 = shalt.err (!%p695_p10)
}
  0x1b   :  { %s699_s1 = scalar_lea.vmem %s61_s24, 1024  ;;  %p704_p12 = scmp.lt.s32.totalorder %s61_s24, %s61_s24 }
  0x1c   :  { %p700_p11 = scmp.ne.s32.totalorder %s61_s24, %s699_s1  ;;  %p705_p13 = scmp.lt.s32.totalorder %s699_s1, %s699_s1 }
  0x1e   :  { %p706_p0 = por %p705_p13, %p704_p12 }
  0x20   :  { %p707_p1 = pnand %p706_p0, %p700_p11 }
  0x22   :  { %710 = shalt.err (!%p707_p1)
}
  0x23   :  { %66 = dma.hbm_to_vmem [thread:$0]  %s967_s5, 1024, %s61_s24, [#allocation8], %s784_s19, %s784_s19, %s785_s20  }
  0x24   :  { %s711_s17 = scalar_lea.hbm %s962_s0, 128 }
  0x25   :  { %p712_p2 = scmp.ne.s32.totalorder %s962_s0, %s711_s17  ;;  %p715_p3 = scmp.lt.u32.totalorder %s711_s17, %s962_s0 }
  0x27   :  { %p717_p4 = pnand %p715_p3, %p712_p2 }
  0x29   :  { %720 = shalt.err (!%p717_p4)
}
  0x2a   :  { %s721_s25 = scalar_lea.vmem %s24_s26, 128  ;;  %p726_p6 = scmp.lt.s32.totalorder %s24_s26, %s24_s26 }
  0x2b   :  { %p722_p5 = scmp.ne.s32.totalorder %s24_s26, %s721_s25  ;;  %p727_p7 = scmp.lt.s32.totalorder %s721_s25, %s721_s25 }
  0x2d   :  { %p728_p8 = por %p727_p7, %p726_p6 }
  0x2f   :  { %p729_p9 = pnand %p728_p8, %p722_p5 }
  0x31   :  { %732 = shalt.err (!%p729_p9)
}
  0x32   :  { %26 = dma.hbm_to_vmem [thread:$0]  %s962_s0, 128, %s24_s26, [#allocation3]  }
  0x33   :  { %s788_s27 = smov [#allocation6]   ;;  %s789_s29 = smov [#allocation9]  }
  0x34   :  { %s46_s28 = sshll.u32 %s788_s27, 4  ;;  %s74_s30 = sshll.u32 %s789_s29, 4  ;;  %s47_s28 = int_to_ptr.vmem [resolvable:$true] %s46_s28  ;;  %s75_s30 = int_to_ptr.vmem [resolvable:$true] %s74_s30 }
  0x35   :  { %s733_s13 = scalar_lea.hbm %s965_s3, 1024 }
  0x36   :  { %p734_p10 = scmp.ne.s32.totalorder %s965_s3, %s733_s13  ;;  %p737_p11 = scmp.lt.u32.totalorder %s733_s13, %s965_s3 }
  0x38   :  { %p739_p12 = pnand %p737_p11, %p734_p10 }
  0x3a   :  { %742 = shalt.err (!%p739_p12)
}
  0x3b   :  { %s743_s0 = scalar_lea.vmem %s47_s28, 1024  ;;  %p748_p0 = scmp.lt.s32.totalorder %s47_s28, %s47_s28 }
  0x3c   :  { %p744_p13 = scmp.ne.s32.totalorder %s47_s28, %s743_s0  ;;  %p749_p1 = scmp.lt.s32.totalorder %s743_s0, %s743_s0 }
  0x3e   :  { %p750_p2 = por %p749_p1, %p748_p0 }
  0x40   :  { %p751_p3 = pnand %p750_p2, %p744_p13 }
  0x42   :  { %754 = shalt.err (!%p751_p3)
}
  0x43   :  { %52 = dma.hbm_to_vmem [thread:$0]  %s965_s3, 1024, %s47_s28, [#allocation5], %s784_s19, %s784_s19, %s785_s20  }
  0x44   :  { %s755_s21 = scalar_lea.hbm %s969_s7, 1024 }
  0x45   :  { %p756_p4 = scmp.ne.s32.totalorder %s969_s7, %s755_s21  ;;  %p759_p5 = scmp.lt.u32.totalorder %s755_s21, %s969_s7 }
  0x47   :  { %p761_p6 = pnand %p759_p5, %p756_p4 }
  0x49   :  { %764 = shalt.err (!%p761_p6)
}
  0x4a   :  { %s765_s24 = scalar_lea.vmem %s75_s30, 1024  ;;  %p770_p8 = scmp.lt.s32.totalorder %s75_s30, %s75_s30 }
  0x4b   :  { %p766_p7 = scmp.ne.s32.totalorder %s75_s30, %s765_s24  ;;  %p771_p9 = scmp.lt.s32.totalorder %s765_s24, %s765_s24 }
  0x4d   :  { %p772_p10 = por %p771_p9, %p770_p8 }
  0x4f   :  { %p773_p11 = pnand %p772_p10, %p766_p7 }
  0x51   :  { %776 = shalt.err (!%p773_p11)
}
  0x52   :  { %80 = dma.hbm_to_vmem [thread:$0]  %s969_s7, 1024, %s75_s30, [#allocation8], %s784_s19, %s784_s19, %s785_s20  }
  0x53   :  { %777 = dma.done.wait [#allocation3], 128  }
  0x54   :  { %778 = vsyncadd [#allocation3], 4294967168 }
  0x55   :  { %779 = dma.done.wait [#allocation5], 1152  }
  0x56   :  { %780 = vsyncadd [#allocation5], 4294966144 }
  0x57   :  { %781 = dma.done.wait [#allocation8], 2048  }
  0x58   :  { %782 = vsyncadd [#allocation8], 4294965248  ;;  %v790_v0 = vmov 0.0   ;;  %vm791_vm0 = vmmov 0   ;;  %v642_v1 = vld [vmem:[#allocation4] sm:$0xff]   ;;  %v99_v2 = vld [vmem:[#allocation2] sm:$0xff] }
  0x59   :  { %567 = vmatprep.subr.bf16.mxu0 %v790_v0  ;;  %569 = vmatprep.mubr.msk.bf16.mxu0 %vm791_vm0, %v790_v0  ;;  %v100_v3 = vpack.c.bf16 %v99_v2, %v99_v2  ;;  %vm116_vm1 = vcmask 130048   ;;  %v643_v4 = vld [vmem:[#allocation6] sm:$0xff]   ;;  %v644_v5 = vld [vmem:[#allocation6 + $0x8] sm:$0xff]   ;;  %v645_v6 = vld [vmem:[#allocation6 + $0x10] sm:$0xff]   ;;  %vm499_vm2 = vcmask 31744  }
  0x5a   :  { %573 = vmatprep.subr.bf16.mxu1 %v790_v0  ;;  %589 = vmatprep.mubr.msk.bf16.mxu1 %vm791_vm0, %v790_v0  ;;  %v646_v7 = vld [vmem:[#allocation6 + $0x18] sm:$0xff]   ;;  %v647_v8 = vld [vmem:[#allocation6 + $0x20] sm:$0xff]   ;;  %v648_v9 = vld [vmem:[#allocation6 + $0x28] sm:$0xff]  }
  0x5b   :  { %568 = vmatpush3.bf16.msra.mxu0 %v642_v1  ;;  %574 = vmatpush3.bf16.msra.mxu1 %v643_v4  ;;  %v649_v10 = vld [vmem:[#allocation6 + $0x30] sm:$0xff]   ;;  %v650_v11 = vld [vmem:[#allocation6 + $0x38] sm:$0xff]   ;;  %v651_v12 = vld [vmem:[#allocation7] sm:$0xff]  }
  0x5c   :  { %593 = vmatprep.subr.bf16.mxu0 %v790_v0  ;;  %575 = vmatprep.subr.bf16.mxu1 %v790_v0  ;;  %v652_v13 = vld [vmem:[#allocation7 + $0x8] sm:$0xff]   ;;  %v653_v14 = vld [vmem:[#allocation7 + $0x10] sm:$0xff]   ;;  %v654_v15 = vld [vmem:[#allocation7 + $0x18] sm:$0xff]  }
  0x5d   :  { %v655_v16 = vld [vmem:[#allocation7 + $0x20] sm:$0xff]   ;;  %v656_v17 = vld [vmem:[#allocation7 + $0x28] sm:$0xff]   ;;  %v657_v26 = vld [vmem:[#allocation7 + $0x30] sm:$0xff]  }
  0x5e   :  { %570 = vmatmul.mubr.msk.bf16.vlgmr.msra.gmra.mrb[0].mxu0 %vm116_vm1, %v100_v3  ;;  %v508_v18 = vld [vmem:[%s964_s2] ss:$0 sm:$0xff]  ;;  %v658_v27 = vld [vmem:[#allocation7 + $0x38] sm:$0xff]   ;;  %v659_v28 = vld [vmem:[#allocation9] sm:$0xff]  }
  0x5f   :  { %609 = vmatprep.mubr.msk.bf16.mxu0 %vm791_vm0, %v790_v0  ;;  %576 = vmatpush3.bf16.msra.mxu1 %v644_v5  ;;  %v660_v29 = vld [vmem:[#allocation9 + $0x8] sm:$0xff]   ;;  %v661_v30 = vld [vmem:[#allocation9 + $0x10] sm:$0xff]   ;;  %v662_v31 = vld [vmem:[#allocation9 + $0x18] sm:$0xff]  }
  0x60   :  { %577 = vmatprep.subr.bf16.mxu1 %v790_v0  ;;  %594 = vmatpush3.bf16.msra.mxu0 %v651_v12  ;;  %v663_v32 = vld [vmem:[#allocation9 + $0x20] sm:$0xff]   ;;  %v664_v33 = vld [vmem:[#allocation9 + $0x28] sm:$0xff]   ;;  %v665_v42 = vld [vmem:[#allocation9 + $0x30] sm:$0xff]  }
  0x61   :  { %595 = vmatprep.subr.bf16.mxu0 %v790_v0  ;;  %v511_v34 = vld [vmem:[%s966_s4] ss:$0 sm:$0xff]  ;;  %v666_v43 = vld [vmem:[#allocation9 + $0x38] sm:$0xff]  }
  0x62   :  { %v520_v44 = vld [vmem:[%s968_s6] ss:$0 sm:$0xff] }
  0x63   :  { %578 = vmatpush3.bf16.msra.mxu1 %v645_v6  ;;  %v529_v52 = vld [vmem:[%s970_s8] ss:$0 sm:$0xff] }
  0x64   :  { %579 = vmatprep.subr.bf16.mxu1 %v790_v0  ;;  %596 = vmatpush3.bf16.msra.mxu0 %v652_v13 }
  0x65   :  { %597 = vmatprep.subr.bf16.mxu0 %v790_v0 }
  0x67   :  { %580 = vmatpush3.bf16.msra.mxu1 %v646_v7 }
  0x68   :  { %581 = vmatprep.subr.bf16.mxu1 %v790_v0  ;;  %598 = vmatpush3.bf16.msra.mxu0 %v653_v14 }
  0x69   :  { %599 = vmatprep.subr.bf16.mxu0 %v790_v0 }
  0x6b   :  { %582 = vmatpush3.bf16.msra.mxu1 %v647_v8 }
  0x6c   :  { %583 = vmatprep.subr.bf16.mxu1 %v790_v0  ;;  %600 = vmatpush3.bf16.msra.mxu0 %v654_v15 }
  0x6d   :  { %601 = vmatprep.subr.bf16.mxu0 %v790_v0 }
  0x6f   :  { %584 = vmatpush3.bf16.msra.mxu1 %v648_v9 }
  0x70   :  { %585 = vmatprep.subr.bf16.mxu1 %v790_v0  ;;  %602 = vmatpush3.bf16.msra.mxu0 %v655_v16 }
  0x71   :  { %603 = vmatprep.subr.bf16.mxu0 %v790_v0 }
  0x73   :  { %586 = vmatpush3.bf16.msra.mxu1 %v649_v10 }
  0x74   :  { %587 = vmatprep.subr.bf16.mxu1 %v790_v0  ;;  %604 = vmatpush3.bf16.msra.mxu0 %v656_v17 }
  0x75   :  { %605 = vmatprep.subr.bf16.mxu0 %v790_v0 }
  0x77   :  { %588 = vmatpush3.bf16.msra.mxu1 %v650_v11 }
  0x78   :  { %613 = vmatprep.subr.bf16.mxu1 %v790_v0  ;;  %606 = vmatpush3.bf16.msra.mxu0 %v657_v26 }
  0x79   :  { %607 = vmatprep.subr.bf16.mxu0 %v790_v0 }
  0x7c   :  { %608 = vmatpush3.bf16.msra.mxu0 %v658_v27 }
 0x131   :  { %v154_v19 = vpop.f32.mrb[0].mxu0 }
 0x132   :  { %v155_v20 = vadd.f32 %v508_v18, %v154_v19  ;;  %v571_v21 = vpop.f32.mrb[1].mxu0 }
 0x133   :  { %v157_v22 = vpop.f32.mrb[2].mxu0 }
 0x134   :  { %v160_v23 = vmax.f32 %v155_v20, 0.0  ;;  %v572_v24 = vpop.f32.mrb[3].mxu0 }
 0x136   :  { %v161_v25 = vpack.c.bf16 %v160_v23, %v160_v23 }
 0x138   :  { %590 = vmatmul.mubr.bf16.vlgmr.msra.gmra.mrb[0].mxu1 %v161_v25 }
 0x139   :  { %629 = vmatprep.mubr.msk.bf16.mxu1 %vm791_vm0, %v790_v0  ;;  %614 = vmatpush3.bf16.msra.mxu1 %v659_v28 }
 0x13a   :  { %615 = vmatprep.subr.bf16.mxu1 %v790_v0 }
 0x13d   :  { %616 = vmatpush3.bf16.msra.mxu1 %v660_v29 }
 0x13e   :  { %617 = vmatprep.subr.bf16.mxu1 %v790_v0 }
 0x141   :  { %618 = vmatpush3.bf16.msra.mxu1 %v661_v30 }
 0x142   :  { %619 = vmatprep.subr.bf16.mxu1 %v790_v0 }
 0x145   :  { %620 = vmatpush3.bf16.msra.mxu1 %v662_v31 }
 0x146   :  { %621 = vmatprep.subr.bf16.mxu1 %v790_v0 }
 0x149   :  { %622 = vmatpush3.bf16.msra.mxu1 %v663_v32 }
 0x14a   :  { %623 = vmatprep.subr.bf16.mxu1 %v790_v0 }
 0x14d   :  { %624 = vmatpush3.bf16.msra.mxu1 %v664_v33 }
 0x14e   :  { %625 = vmatprep.subr.bf16.mxu1 %v790_v0 }
 0x151   :  { %626 = vmatpush3.bf16.msra.mxu1 %v665_v42 }
 0x152   :  { %627 = vmatprep.subr.bf16.mxu1 %v790_v0 }
 0x155   :  { %628 = vmatpush3.bf16.msra.mxu1 %v666_v43 }
 0x20b   :  { %v267_v35 = vpop.f32.mrb[0].mxu1 }
 0x20c   :  { %v268_v36 = vadd.f32 %v511_v34, %v267_v35  ;;  %v591_v37 = vpop.f32.mrb[1].mxu1 }
 0x20d   :  { %v270_v38 = vpop.f32.mrb[2].mxu1 }
 0x20e   :  { %v273_v39 = vmax.f32 %v268_v36, 0.0  ;;  %v592_v40 = vpop.f32.mrb[3].mxu1 }
 0x210   :  { %v274_v41 = vpack.c.bf16 %v273_v39, %v273_v39 }
 0x212   :  { %610 = vmatmul.mubr.bf16.vlgmr.msra.gmra.mrb[4].mxu0 %v274_v41 }
 0x2e5   :  { %v380_v45 = vpop.f32.mrb[4].mxu0 }
 0x2e6   :  { %v381_v46 = vadd.f32 %v520_v44, %v380_v45  ;;  %v611_v47 = vpop.f32.mrb[5].mxu0 }
 0x2e7   :  { %v383_v48 = vpop.f32.mrb[6].mxu0 }
 0x2e8   :  { %v386_v49 = vmax.f32 %v381_v46, 0.0  ;;  %v612_v50 = vpop.f32.mrb[7].mxu0 }
 0x2ea   :  { %v387_v51 = vpack.c.bf16 %v386_v49, %v386_v49 }
 0x2ec   :  { %630 = vmatmul.mubr.bf16.vlgmr.msra.gmra.mrb[4].mxu1 %v387_v51 }
 0x3bf   :  { %v493_v53 = vpop.f32.mrb[4].mxu1 }
 0x3c0   :  { %v494_v54 = vadd.f32 %v529_v52, %v493_v53  ;;  %v631_v55 = vpop.f32.mrb[5].mxu1 }
 0x3c1   :  { %v496_v56 = vpop.f32.mrb[6].mxu1 }
 0x3c2   :  { %500 = vst.msk [vmem:[%s971_s9] sm:$0xff] %vm499_vm2, %v494_v54  ;;  %v632_v57 = vpop.f32.mrb[7].mxu1 }
 0x3c3   :  { %505 = vsyncpa [#allocation3], 1 }
 0x3c4   :  { %506 = vsyncpa [#allocation5], 1 }
 0x3c5   :  { %507 = vsyncpa [#allocation8], 1 }

</bundles_post_ra>
